<compile_context>
chip_gen: v5e
topology: v5e:2x2
jax: 0.10.0
libtpu: 0.0.40
codegen_flags: <defaults>
</compile_context>

<pallas_src>
import jax
import jax.numpy as jnp
from jax.experimental import pallas as pl
from jax.experimental.pallas import tpu as pltpu

PATCH = 4            # patch size of the synthetic patch-embedding backbone
_GATHER_G = 8        # gathered rows per grid step (one full sublane tile)


def _round_up(x, m):
    return ((x + m - 1) // m) * m


# --------------------------------------------------------------------------
# Kernel 1: shared projection  (M, D_in) @ (D_in, D_out) + bias
#   - bf16 MXU operands (activation cast done in-kernel), f32 accumulation
#   - accumulates directly into the resident output block (no scratch)
# --------------------------------------------------------------------------
def _proj_kernel(x_ref, w_ref, b_ref, o_ref):
    k = pl.program_id(2)

    @pl.when(k == 0)
    def _():
        o_ref[...] = jnp.zeros_like(o_ref)

    # VPU cast to bf16 rides under the MXU; saves a separate HBM cast pass.
    o_ref[...] += jnp.dot(x_ref[...].astype(jnp.bfloat16), w_ref[...],
                          preferred_element_type=jnp.float32)

    @pl.when(k == pl.num_programs(2) - 1)
    def _():
        o_ref[...] += b_ref[...]          # f32 bias epilogue (safe on v5e too)


@jax.jit
def _project_tokens(tokens2d, w_bf16, bias_f32):
    """tokens2d: (M, D_in) f32; w_bf16: (D_in, Dp) bf16; bias_f32: (1, Dp) f32.
    Returns (M_pad, Dp) f32, padded along M only when M % tm != 0."""
    M, d_in = tokens2d.shape
    d_p = w_bf16.shape[1]

    # Reduction tile over D_in (full-dim block when D_in is not a 128-multiple,
    # so the activations are never padded along D_in).
    if d_in % 128 == 0:
        if d_in % 1024 == 0:
            tk = 1024
        elif d_in % 512 == 0:
            tk = 512
        elif d_in % 256 == 0:
            tk = 256
        else:
            tk = 128
    else:
        tk = d_in

    # Output lane tile: full-dim block for the toy D_out < 128 case (no padded
    # bytes moved, no trailing slice); 256/128 for real embed dims.
    if d_p % 128 == 0:
        tn = 256 if d_p % 256 == 0 else 128
    else:
        tn = d_p

    # M tile: keep >= 2 parallel M blocks once M >= 256 so both v7x TCs engage;
    # grow tiles for large M (fewer grid steps, W streamed fewer times).
    if M >= 2048:
        tm = 512
    elif M >= 1024:
        tm = 256
    elif M >= 256:
        tm = 128
    else:
        tm = _round_up(M, 8)
    m_p = _round_up(M, tm)

    x = tokens2d if m_p == M else jnp.pad(tokens2d, ((0, m_p - M), (0, 0)))

    return pl.pallas_call(
        _proj_kernel,
        out_shape=jax.ShapeDtypeStruct((m_p, d_p), jnp.float32),
        grid_spec=pltpu.PrefetchScalarGridSpec(
            num_scalar_prefetch=0,
            grid=(m_p // tm, d_p // tn, d_in // tk),
            in_specs=[
                pl.BlockSpec((tm, tk), lambda i, j, k: (i, k)),   # tokens f32
                pl.BlockSpec((tk, tn), lambda i, j, k: (k, j)),   # weight bf16
                pl.BlockSpec((1, tn), lambda i, j, k: (0, j)),    # bias f32
            ],
            out_specs=pl.BlockSpec((tm, tn), lambda i, j, k: (i, j)),
        ),
        compiler_params=pltpu.CompilerParams(
            # parallel M/N (megacore on v7x), reduction axis last.
            dimension_semantics=("parallel", "parallel", "arbitrary"),
            # Largest tile set here is a few MiB double-buffered; 32 MiB scoped
            # is safe on v5e/v6e (128 MiB) and leaves headroom on v7x (64 MiB).
            vmem_limit_bytes=32 * 1024 * 1024,
        ),
    )(x, w_bf16, bias_f32)


# --------------------------------------------------------------------------
# Kernel 2: batched row gather of projected tokens.
#   - projected table resident in VMEM for the whole call
#   - indices scalar-prefetched into SMEM
#   - 8 rows per grid step -> one dense (8, D) tile store per step
# --------------------------------------------------------------------------
def _gather_vmem_kernel(idx_ref, proj_ref, o_ref):
    base = pl.program_id(0) * _GATHER_G
    rows = [proj_ref[pl.ds(idx_ref[base + r], 1), :]
            for r in range(_GATHER_G)]
    o_ref[...] = jnp.concatenate(rows, axis=0)


@jax.jit
def _gather_rows_vmem(proj, rows):
    """proj: (M_pad, Dp) f32 table; rows: (R,) int32 absolute row ids."""
    r_total = rows.shape[0]
    d_p = proj.shape[1]
    r_pad = _round_up(r_total, _GATHER_G)
    if r_pad != r_total:
        rows = jnp.pad(rows, (0, r_pad - r_total))   # row 0 is valid; sliced off
    out = pl.pallas_call(
        _gather_vmem_kernel,
        out_shape=jax.ShapeDtypeStruct((r_pad, d_p), proj.dtype),
        grid_spec=pltpu.PrefetchScalarGridSpec(
            num_scalar_prefetch=1,                    # row ids live in SMEM
            grid=(r_pad // _GATHER_G,),
            in_specs=[
                # Whole projected table resident in VMEM for the whole call.
                pl.BlockSpec(memory_space=pltpu.MemorySpace.VMEM),
            ],
            out_specs=pl.BlockSpec((_GATHER_G, d_p), lambda g, idx: (g, 0)),
        ),
        compiler_params=pltpu.CompilerParams(
            dimension_semantics=("arbitrary",),
            vmem_limit_bytes=28 * 1024 * 1024,
        ),
    )(rows, proj)
    return out[:r_total] if r_pad != r_total else out


def _vmem_table_budget_bytes():
    try:
        cap = pltpu.get_tpu_info().vmem_capacity_bytes
    except Exception:
        cap = 64 * 1024 * 1024       # assume the smallest generation (v7x)
    return min(16 * 1024 * 1024, cap // 4)


def _gather_rows(proj, rows):
    table_bytes = proj.shape[0] * proj.shape[1] * proj.dtype.itemsize
    if table_bytes <= _vmem_table_budget_bytes():
        return _gather_rows_vmem(proj, rows)
    # TODO(synk): tables larger than the VMEM budget would want a batched
    # manual-DMA gather (memory_space=pl.ANY + per-row async copies, double
    # buffered); fall back to an XLA gather for that rare case.
    return jnp.take(proj, rows, axis=0)


# --------------------------------------------------------------------------
# Synthetic ViT-style backbone: patchify -> project once -> (per-mask) gather.
# --------------------------------------------------------------------------
class PatchProjectBackbone:
    """Patch-embedding backbone.  `masks` may be a single (B, K) index array or
    a list of them; masks=None returns the full (B, N, D_out) token map."""

    def __init__(self, w, bias, patch=PATCH):
        self.patch = patch
        self.d_in, self.d_out = w.shape
        # Pad D_out only in the rare >=128-and-not-a-multiple case.
        if self.d_out % 128 == 0 or self.d_out < 128:
            d_p = self.d_out
        else:
            d_p = _round_up(self.d_out, 128)
        self.d_p = d_p
        # Hoisted ONCE (perf feedback): bf16 weight / f32 bias reused per call.
        w_bf16 = w.astype(jnp.bfloat16)
        b_f32 = bias.astype(jnp.float32)
        if d_p != self.d_out:
            w_bf16 = jnp.pad(w_bf16, ((0, 0), (0, d_p - self.d_out)))
            b_f32 = jnp.pad(b_f32, (0, d_p - self.d_out))
        self.w_bf16 = w_bf16
        self.b_f32 = b_f32.reshape(1, d_p)

    def __call__(self, x, masks=None, targets=None):
        # TODO(synk): `targets` has no role in this synthetic encoder; accepted
        # for API parity with the PyTorch wrapper and ignored.
        del targets
        B, C, H, W = x.shape
        P = self.patch
        N = (H // P) * (W // P)
        M = B * N

        # Patchify once (plain-JAX glue): NCHW -> (B*N, D_in) f32 tokens; the
        # bf16 cast for the MXU happens inside the projection kernel.
        tokens = x.reshape(B, C, H // P, P, W // P, P)
        tokens = tokens.transpose(0, 2, 4, 1, 3, 5).reshape(M, self.d_in)
        tokens = tokens.astype(jnp.float32)

        proj = _project_tokens(tokens, self.w_bf16, self.b_f32)  # (M_pad, Dp)

        if masks is None:
            out = proj
            if out.shape[0] != M:
                out = out[:M]
            if out.shape[1] != self.d_out:
                out = out[:, :self.d_out]
            return out.reshape(B, N, self.d_out)

        single = not isinstance(masks, list)
        mask_list = [masks] if single else list(masks)
        # Clamp indices (take_along_axis-with-valid-index semantics) instead of
        # erroring on out-of-range rows.
        mask_arrs = [jnp.clip(jnp.asarray(m, dtype=jnp.int32), 0, N - 1)
                     for m in mask_list]
        row_base = jnp.arange(B, dtype=jnp.int32)[:, None] * N   # (B, 1)

        if len({m.shape for m in mask_arrs}) == 1:
            # All masks share a shape: fuse into ONE gather call.
            nm = len(mask_arrs)
            K = mask_arrs[0].shape[1]
            rows = (jnp.stack(mask_arrs, 0) + row_base[None]).reshape(-1)
            g = _gather_rows(proj, rows)                    # (nm*B*K, Dp)
            if g.shape[-1] != self.d_out:
                g = g[:, :self.d_out]
            g = g.reshape(nm, B, K, self.d_out)
            outs = [g[i] for i in range(nm)]
        else:
            outs = []
            for m in mask_arrs:
                K = m.shape[1]
                rows = (m + row_base).reshape(-1)
                gm = _gather_rows(proj, rows)
                if gm.shape[-1] != self.d_out:
                    gm = gm[:, :self.d_out]
                outs.append(gm.reshape(B, K, self.d_out))
        return outs[0] if single else outs


class MultiMaskWrapper:
    """Port of the PyTorch MultiMaskWrapper forward control flow.  The per-mask
    loop is delegated to the backbone (project once, gather per mask); returned
    semantics are identical: masks=None -> single output, otherwise a list of
    per-mask outputs (a non-list mask is wrapped into a one-element list)."""

    def __init__(self, backbone):
        self.backbone = backbone

    def __call__(self, x, masks=None, targets=None):
        if masks is None:
            return self.backbone(x)
        if not isinstance(masks, list):
            masks = [masks]
        if targets is None:
            return self.backbone(x, masks=masks)
        return self.backbone(x, masks=masks, targets=targets)


# --------------------------------------------------------------------------
# Pure-JAX reference (emulates the bf16 MXU input precision).
# --------------------------------------------------------------------------
def _reference_backbone(x, w, bias, masks=None):
    B, C, H, W = x.shape
    P = PATCH
    N = (H // P) * (W // P)
    tokens = x.reshape(B, C, H // P, P, W // P, P)
    tokens = tokens.transpose(0, 2, 4, 1, 3, 5).reshape(B, N, C * P * P)
    tok = tokens.astype(jnp.bfloat16).astype(jnp.float32)
    w_b = w.astype(jnp.bfloat16).astype(jnp.float32)
    proj = tok @ w_b + bias[None, None, :].astype(jnp.float32)
    if masks is None:
        return proj
    idx = jnp.clip(masks.astype(jnp.int32), 0, N - 1)
    return jnp.take_along_axis(proj, idx[..., None], axis=1)


if __name__ == "__main__":
    key = jax.random.PRNGKey(0)
    k_x, k_w, k_b, k_m1, k_m2, k_m3 = jax.random.split(key, 6)

    B, C, H, W = 2, 4, 16, 16
    N = (H // PATCH) * (W // PATCH)      # 16 tokens
    D_in = C * PATCH * PATCH             # 64
    D_out = 32
    K = 8                                # kept tokens per mask

    x = jax.random.normal(k_x, (B, C, H, W), dtype=jnp.float32)
    w = (jax.random.normal(k_w, (D_in, D_out), dtype=jnp.float32)
         / jnp.sqrt(jnp.float32(D_in)))
    bias = jax.random.normal(k_b, (D_out,), dtype=jnp.float32) * 0.01

    mask_a = jax.random.randint(k_m1, (B, K), 0, N, dtype=jnp.int32)
    mask_b = jax.random.randint(k_m2, (B, K), 0, N, dtype=jnp.int32)
    mask_c = jax.random.randint(k_m3, (B, 5), 0, N, dtype=jnp.int32)  # ragged

    wrapper = MultiMaskWrapper(PatchProjectBackbone(w, bias))

    # masks=None -> single (B, N, D_out) array, no gather kernel at all.
    out_full = jax.block_until_ready(wrapper(x))
    ref_full = _reference_backbone(x, w, bias)
    assert out_full.shape == (B, N, D_out)
    assert jnp.allclose(out_full, ref_full, atol=1e-3, rtol=1e-3)

    # list of same-shape masks -> one fused gather call, list of outputs.
    outs = jax.block_until_ready(wrapper(x, masks=[mask_a, mask_b]))
    assert isinstance(outs, list) and len(outs) == 2
    for o, m in zip(outs, [mask_a, mask_b]):
        assert o.shape == (B, K, D_out)
        assert jnp.allclose(o, _reference_backbone(x, w, bias, masks=m),
                            atol=1e-3, rtol=1e-3)

    # heterogeneous mask shapes -> per-mask gather calls (exercises row pad).
    outs_h = jax.block_until_ready(wrapper(x, masks=[mask_a, mask_c]))
    assert isinstance(outs_h, list) and len(outs_h) == 2
    assert outs_h[1].shape == (B, 5, D_out)
    assert jnp.allclose(outs_h[0],
                        _reference_backbone(x, w, bias, masks=mask_a),
                        atol=1e-3, rtol=1e-3)
    assert jnp.allclose(outs_h[1],
                        _reference_backbone(x, w, bias, masks=mask_c),
                        atol=1e-3, rtol=1e-3)

    # single (non-list) mask -> list of one output.
    out_single = jax.block_until_ready(wrapper(x, masks=mask_a))
    assert isinstance(out_single, list) and len(out_single) == 1
    assert jnp.allclose(out_single[0],
                        _reference_backbone(x, w, bias, masks=mask_a),
                        atol=1e-3, rtol=1e-3)

    print("KERNEL_OK")
</pallas_src>

<mosaic_0001>
module attributes {stable_mosaic.version = 11 : i64} {
  func.func @_proj_kernel(%arg0: i32, %arg1: i32, %arg2: i32, %arg3: memref<32x64xf32, #tpu.memory_space<vmem>>, %arg4: memref<64x32xbf16, #tpu.memory_space<vmem>>, %arg5: memref<1x32xf32, #tpu.memory_space<vmem>>, %arg6: memref<32x32xf32, #tpu.memory_space<vmem>>) attributes {dimension_semantics = [#tpu.dimension_semantics<parallel>, #tpu.dimension_semantics<parallel>, #tpu.dimension_semantics<arbitrary>], iteration_bounds = array<i64: 1, 1, 1>, scalar_prefetch = 0 : i64, scratch_operands = 0 : i64, tpu.core_type = #tpu.core_type<tc>, window_params = [{transform_indices = @transform_0, window_bounds = array<i64: 32, 64>}, {transform_indices = @transform_1, window_bounds = array<i64: 64, 32>}, {transform_indices = @transform_2, window_bounds = array<i64: 1, 32>}, {transform_indices = @transform_3, window_bounds = array<i64: 32, 32>}]} {
    %c0_i32 = arith.constant 0 : i32
    %0 = arith.cmpi eq, %arg2, %c0_i32 : i32
    %1 = arith.extui %0 : i1 to i32
    %c0_i32_0 = arith.constant 0 : i32
    %2 = arith.cmpi ne, %1, %c0_i32_0 : i32
    scf.if %2 {
      %cst_10 = arith.constant 0.000000e+00 : f32
      %13 = vector.broadcast %cst_10 : f32 to vector<32x32xf32>
      %c0_11 = arith.constant 0 : index
      %c0_12 = arith.constant 0 : index
      %14 = vector.load %arg6[%c0_11, %c0_12] : memref<32x32xf32, #tpu.memory_space<vmem>>, vector<32x32xf32>
      tpu.vector_store %arg6[%c0_11, %c0_12], %13 {strides = array<i32>} : memref<32x32xf32, #tpu.memory_space<vmem>>, vector<32x32xf32>,
    } else {
    }
    %c0 = arith.constant 0 : index
    %c0_1 = arith.constant 0 : index
    %3 = vector.load %arg6[%c0, %c0_1] : memref<32x32xf32, #tpu.memory_space<vmem>>, vector<32x32xf32>
    %c0_2 = arith.constant 0 : index
    %c0_3 = arith.constant 0 : index
    %4 = vector.load %arg3[%c0_2, %c0_3] : memref<32x64xf32, #tpu.memory_space<vmem>>, vector<32x64xf32>
    %5 = arith.truncf %4 : vector<32x64xf32> to vector<32x64xbf16>
    %c0_4 = arith.constant 0 : index
    %c0_5 = arith.constant 0 : index
    %6 = vector.load %arg4[%c0_4, %c0_5] : memref<64x32xbf16, #tpu.memory_space<vmem>>, vector<64x32xbf16>
    %cst = arith.constant dense<0.000000e+00> : vector<32x32xf32>
    %7 = tpu.matmul %5, %6, %cst {dimension_numbers = #tpu.dot_dimension_numbers<[1], [0], [0], [1], [0, 0, 1, 1], [], []>} : vector<32x64xbf16>, vector<64x32xbf16>, vector<32x32xf32> -> vector<32x32xf32>
    %8 = arith.addf %3, %7 : vector<32x32xf32>
    %c0_6 = arith.constant 0 : index
    %c0_7 = arith.constant 0 : index
    %9 = vector.load %arg6[%c0_6, %c0_7] : memref<32x32xf32, #tpu.memory_space<vmem>>, vector<32x32xf32>
    tpu.vector_store %arg6[%c0_6, %c0_7], %8 {strides = array<i32>} : memref<32x32xf32, #tpu.memory_space<vmem>>, vector<32x32xf32>,
    %c0_i32_8 = arith.constant 0 : i32
    %10 = arith.cmpi eq, %arg2, %c0_i32_8 : i32
    %11 = arith.extui %10 : i1 to i32
    %c0_i32_9 = arith.constant 0 : i32
    %12 = arith.cmpi ne, %11, %c0_i32_9 : i32
    scf.if %12 {
      %c0_10 = arith.constant 0 : index
      %c0_11 = arith.constant 0 : index
      %13 = vector.load %arg6[%c0_10, %c0_11] : memref<32x32xf32, #tpu.memory_space<vmem>>, vector<32x32xf32>
      %c0_12 = arith.constant 0 : index
      %c0_13 = arith.constant 0 : index
      %14 = vector.load %arg5[%c0_12, %c0_13] : memref<1x32xf32, #tpu.memory_space<vmem>>, vector<1x32xf32>
      %15 = vector.broadcast %14 : vector<1x32xf32> to vector<32x32xf32>
      %16 = arith.addf %13, %15 : vector<32x32xf32>
      %c0_14 = arith.constant 0 : index
      %c0_15 = arith.constant 0 : index
      %17 = vector.load %arg6[%c0_14, %c0_15] : memref<32x32xf32, #tpu.memory_space<vmem>>, vector<32x32xf32>
      tpu.vector_store %arg6[%c0_14, %c0_15], %16 {strides = array<i32>} : memref<32x32xf32, #tpu.memory_space<vmem>>, vector<32x32xf32>,
    } else {
    }
    return
  }
  func.func @transform_0(%arg0: i32, %arg1: i32, %arg2: i32) -> (i32, i32) {
    %c0_i32 = arith.constant 0 : i32
    return %arg0, %arg2 : i32, i32
  }
  func.func @transform_1(%arg0: i32, %arg1: i32, %arg2: i32) -> (i32, i32) {
    %c0_i32 = arith.constant 0 : i32
    return %arg2, %arg1 : i32, i32
  }
  func.func @transform_2(%arg0: i32, %arg1: i32, %arg2: i32) -> (i32, i32) {
    %c0_i32 = arith.constant 0 : i32
    %c0_i32_0 = arith.constant 0 : i32
    return %c0_i32, %arg1 : i32, i32
  }
  func.func @transform_3(%arg0: i32, %arg1: i32, %arg2: i32) -> (i32, i32) {
    %c0_i32 = arith.constant 0 : i32
    return %arg0, %arg1 : i32, i32
  }
}

</mosaic_0001>

<bundles_post_ra>
// kernel: _project_tokens.1
= control target key start
LH: loop header
LB: loop body
LE: loop exit
PB: predicated region body
PF: predicated region fallthrough
CT: control target
= control target key end

     0   :  { %vm20_vm0 = vcmask 261120   ;;  %v196_v1 = vmov 0.0   ;;  %s262_s0 = inlined_call_operand.vmem [shape: f32[32,64], index: 0, kind: input, shape index: {}]   ;;  %s263_s1 = inlined_call_operand.vmem [shape: bf16[64,32], index: 1, kind: input, shape index: {}]   ;;  %s264_s2 = inlined_call_operand.vmem [shape: f32[1,32], index: 2, kind: input, shape index: {}]   ;;  %s265_s3 = inlined_call_operand.hbm [shape: f32[32,32], index: 3, kind: output, shape index: {}]  }
   0x1   :  { %v160_v0 = vld [vmem:[%s263_s1 + $0x18] sm:$0xff]  ;;  %21 = vst.msk [vmem:[#allocation2] sm:$0xff] %vm20_vm0, %v196_v1  ;;  %v159_v2 = vld [vmem:[%s263_s1 + $0x10] sm:$0xff] }
   0x2   :  { %78 = vmatpush.bf16.msra.mxu0 %v160_v0  ;;  %161 = vmatpush.bf16.msra.mxu1 %v160_v0  ;;  %22 = vst.msk [vmem:[#allocation2 + $0x8] sm:$0xff] %vm20_vm0, %v196_v1 }
   0x3   :  { %23 = vst.msk [vmem:[#allocation2 + $0x10] sm:$0xff] %vm20_vm0, %v196_v1 }
   0x4   :  { %8 = vsyncpa [#allocation3], 0  ;;  %24 = vst.msk [vmem:[#allocation2 + $0x18] sm:$0xff] %vm20_vm0, %v196_v1  ;;  %v158_v3 = vld [vmem:[%s263_s1 + $0x8] sm:$0xff]  ;;  %v157_v4 = vld [vmem:[%s263_s1] sm:$0xff]  ;;  %vm67_vm1 = vcmask 523264  }
   0x5   :  { %v29_v5 = vld [vmem:[%s262_s0] sm:$0xff]  ;;  %v30_v6 = vld [vmem:[%s262_s0 + $0x8] sm:$0xff]  ;;  %v31_v7 = vld [vmem:[%s262_s0 + $0x10] sm:$0xff]  ;;  %s197_s28 = smov [#allocation2]   ;;  %s127_s4 = sshll.u32 %s265_s3, 4  ;;  %s128_s4 = int_to_ptr.hbm [resolvable:$true] %s127_s4 }
   0x6   :  { %79 = vmatpush.bf16.msra.mxu0 %v159_v2  ;;  %162 = vmatpush.bf16.msra.mxu1 %v159_v2  ;;  %v32_v8 = vld [vmem:[%s262_s0 + $0x18] sm:$0xff]  ;;  %v33_v9 = vpack.c.bf16 %v30_v6, %v29_v5  ;;  %v169_v19 = vld [vmem:[%s264_s2] ss:$0 sm:$0xff]  ;;  %s125_s29 = sshll.u32 %s197_s28, 4  ;;  %s198_s5 = smov 128   ;;  %s126_s29 = int_to_ptr.vmem [resolvable:$true] %s125_s29 }
   0x7   :  { %v34_v10 = vpack.c.bf16 %v32_v8, %v31_v7  ;;  %s199_s6 = smov 8  }
   0x8   :  { %v25_v11 = vld [vmem:[#allocation2] sm:$0xff] }
   0x9   :  { %v26_v17 = vld [vmem:[#allocation2 + $0x8] sm:$0xff] }
   0xa   :  { %80 = vmatpush.bf16.msra.mxu0 %v158_v3  ;;  %163 = vmatpush.bf16.msra.mxu1 %v158_v3  ;;  %v27_v12 = vld [vmem:[#allocation2 + $0x10] sm:$0xff] }
   0xb   :  { %v28_v18 = vld [vmem:[#allocation2 + $0x18] sm:$0xff] }
   0xe   :  { %81 = vmatpush.bf16.msra.mxu0 %v157_v4  ;;  %164 = vmatpush.bf16.msra.mxu1 %v157_v4 }
  0x11   :  { %155 = vmatmul.msk.bf16.vlgmr.msra.gmra.mxu0 %vm67_vm1, %v33_v9  ;;  %156 = vmatmul.msk.bf16.vlgmr.msra.gmra.mxu1 %vm67_vm1, %v34_v10 }
  0x8e   :  { %v83_v13 = vpop.f32.mrf.mxu0  ;;  %v88_v14 = vpop.f32.mrf.mxu1 }
  0x8f   :  { %v93_v15 = vadd.f32 %v83_v13, %v25_v11  ;;  %v95_v16 = vadd.f32 %v88_v14, %v27_v12 }
  0x91   :  { %98 = vst.msk [vmem:[#allocation2] sm:$0xff] %vm20_vm0, %v93_v15 }
  0x92   :  { %100 = vst.msk [vmem:[#allocation2 + $0x10] sm:$0xff] %vm20_vm0, %v95_v16 }
  0x96   :  { %v85_v20 = vpop.f32.mrf.mxu0  ;;  %v90_v21 = vpop.f32.mrf.mxu1 }
  0x97   :  { %v94_v22 = vadd.f32 %v85_v20, %v26_v17  ;;  %v96_v23 = vadd.f32 %v90_v21, %v28_v18 }
  0x98   :  { %v105_v24 = vld [vmem:[#allocation2] sm:$0xff] }
  0x99   :  { %v113_v25 = vadd.f32 %v169_v19, %v105_v24  ;;  %v107_v26 = vld [vmem:[#allocation2 + $0x10] sm:$0xff]  ;;  %99 = vst.msk [vmem:[#allocation2 + $0x8] sm:$0xff] %vm20_vm0, %v94_v22 }
  0x9a   :  { %v115_v27 = vadd.f32 %v169_v19, %v107_v26  ;;  %101 = vst.msk [vmem:[#allocation2 + $0x18] sm:$0xff] %vm20_vm0, %v96_v23 }
  0x9b   :  { %117 = vst.msk [vmem:[#allocation2] sm:$0xff] %vm20_vm0, %v113_v25 }
  0x9c   :  { %119 = vst.msk [vmem:[#allocation2 + $0x10] sm:$0xff] %vm20_vm0, %v115_v27 }
  0xa0   :  { %v106_v28 = vld [vmem:[#allocation2 + $0x8] sm:$0xff] }
  0xa1   :  { %v114_v29 = vadd.f32 %v169_v19, %v106_v28  ;;  %v108_v30 = vld [vmem:[#allocation2 + $0x18] sm:$0xff] }
  0xa2   :  { %v116_v31 = vadd.f32 %v169_v19, %v108_v30 }
  0xa3   :  { %118 = vst.msk [vmem:[#allocation2 + $0x8] sm:$0xff] %vm20_vm0, %v114_v29 }
  0xa4   :  { %120 = vst.msk [vmem:[#allocation2 + $0x18] sm:$0xff] %vm20_vm0, %v116_v31 }
  0xa5   :  { %133 = dma.vmem_to_hbm [thread:$0]  %s126_s29, 512, %s128_s4, [#allocation3], %s198_s5, %s198_s5, %s199_s6  }
  0xa6   :  { %194 = dma.done.wait [#allocation3], 512  }
  0xa7   :  { %195 = vsyncadd [#allocation3], 4294966784 }
  0xa8   :  { %138 = vsyncpa [#allocation3], 1 }

</bundles_post_ra>
